<compile_context>
chip_gen: v5e
topology: v5e:2x2
jax: 0.10.0
libtpu: 0.0.40
codegen_flags: <defaults>
</compile_context>

<pallas_src>
import functools
import math

import jax
import jax.numpy as jnp
import numpy as np
from jax.experimental import pallas as pl
from jax.experimental.pallas import tpu as pltpu


# ----------------------------- kernel --------------------------------------


def ffn_kernel(x_ref, g_ref, b_ref, w1_ref, b1_ref, w2_ref, b2_ref, o_ref, *,
               eps):
    # x_ref: (TM, D) rows of the flattened input.
    x = x_ref[...].astype(jnp.float32)

    # ---- LayerNorm (f32 VPU math) ----
    m = jnp.mean(x, axis=-1, keepdims=True)
    var = jnp.mean((x - m) ** 2, axis=-1, keepdims=True)
    xn = (x - m) * jax.lax.rsqrt(var + eps) * g_ref[...] + b_ref[...]

    # ---- Linear(dim -> hidden): bf16 MXU operands, f32 accumulation ----
    h = jnp.dot(xn.astype(jnp.bfloat16), w1_ref[...],
                preferred_element_type=jnp.float32) + b1_ref[...]

    # ---- exact GELU (PyTorch nn.GELU default), f32 ----
    h = 0.5 * h * (1.0 + jax.lax.erf(h * (1.0 / math.sqrt(2.0))))

    # ---- Linear(hidden -> dim): bf16 MXU operands, f32 accumulation ----
    y = jnp.dot(h.astype(jnp.bfloat16), w2_ref[...],
                preferred_element_type=jnp.float32) + b2_ref[...]

    o_ref[...] = y.astype(o_ref.dtype)


# ----------------------------- wrapper --------------------------------------


def _round_up(x, m):
    return (x + m - 1) // m * m


def feedforward_forward(x, params, *, block_rows=256, eps=1e-5):
    """x: (..., dim) float32.  Returns same shape/dtype."""
    orig_shape = x.shape
    D = orig_shape[-1]
    x2 = x.reshape(-1, D)
    N = x2.shape[0]

    # Row tile: fold batch*seq into sublane-dense (TM, D) slabs.
    tm = min(block_rows, _round_up(N, 8))
    n_pad = _round_up(max(N, tm), tm)
    if n_pad != N:
        x2 = jnp.pad(x2, ((0, n_pad - N), (0, 0)))

    g, b = params["ln_g"], params["ln_b"]
    w1, b1 = params["w1"], params["b1"]
    w2, b2 = params["w2"], params["b2"]

    def full_spec(a):
        nd = a.ndim
        # whole (small) weight array resident in VMEM; same block every step
        return pl.BlockSpec(a.shape, lambda i, nd=nd: (0,) * nd)

    out = pl.pallas_call(
        functools.partial(ffn_kernel, eps=eps),
        grid=(n_pad // tm,),
        in_specs=[pl.BlockSpec((tm, D), lambda i: (i, 0)),
                  full_spec(g), full_spec(b),
                  full_spec(w1), full_spec(b1),
                  full_spec(w2), full_spec(b2)],
        out_specs=pl.BlockSpec((tm, D), lambda i: (i, 0)),
        out_shape=jax.ShapeDtypeStruct((n_pad, D), x.dtype),
        compiler_params=pltpu.CompilerParams(
            dimension_semantics=("parallel",)),
    )(x2, g, b, w1, b1, w2, b2)

    return out[:N].reshape(orig_shape)


# ------------------------- parameter construction ---------------------------


def make_params(key, dim, hidden_dim):
    # Linear weights stored (in, out) -- transposed vs nn.Linear's (out, in);
    # y = x @ W + b is mathematically identical.  Weights in bf16 (MXU
    # operands), biases and LayerNorm affine params in f32.
    k1, k2, k3, k4 = jax.random.split(key, 4)
    lim1 = 1.0 / math.sqrt(dim)
    lim2 = 1.0 / math.sqrt(hidden_dim)
    return dict(
        ln_g=jnp.ones((1, dim), jnp.float32),
        ln_b=jnp.zeros((1, dim), jnp.float32),
        w1=jax.random.uniform(k1, (dim, hidden_dim), jnp.float32,
                              -lim1, lim1).astype(jnp.bfloat16),
        b1=jax.random.uniform(k2, (1, hidden_dim), jnp.float32, -lim1, lim1),
        w2=jax.random.uniform(k3, (hidden_dim, dim), jnp.float32,
                              -lim2, lim2).astype(jnp.bfloat16),
        b2=jax.random.uniform(k4, (1, dim), jnp.float32, -lim2, lim2),
    )


# ------------------------------ pure-JAX reference ---------------------------


def ref_forward(x, params, eps=1e-5):
    g = params["ln_g"]
    b = params["ln_b"]
    w1 = params["w1"].astype(jnp.float32)
    w2 = params["w2"].astype(jnp.float32)
    b1, b2 = params["b1"], params["b2"]

    m = x.mean(-1, keepdims=True)
    v = ((x - m) ** 2).mean(-1, keepdims=True)
    xn = (x - m) / jnp.sqrt(v + eps) * g + b
    h = xn @ w1 + b1
    h = 0.5 * h * (1.0 + jax.lax.erf(h / math.sqrt(2.0)))
    return h @ w2 + b2


# ------------------------------------ main ----------------------------------

if __name__ == "__main__":
    B, S, dim, hidden_dim = 2, 8, 32, 128

    key = jax.random.PRNGKey(0)
    params = make_params(jax.random.fold_in(key, 1), dim, hidden_dim)
    x = jax.random.normal(jax.random.fold_in(key, 2), (B, S, dim), jnp.float32)

    y = feedforward_forward(x, params)
    y = jax.block_until_ready(y)

    y_ref = jax.block_until_ready(ref_forward(x, params))
    # Tolerance loosened vs an all-f32 pipeline because MXU operands are bf16
    # (f32 accumulation); pointwise math (LN / GELU) remains f32.
    np.testing.assert_allclose(np.asarray(y), np.asarray(y_ref),
                               rtol=2e-2, atol=2e-2)
    print("KERNEL_OK")
</pallas_src>

<mosaic_0001>
module attributes {stable_mosaic.version = 11 : i64} {
  func.func @ffn_kernel(%arg0: i32, %arg1: memref<16x32xf32, #tpu.memory_space<vmem>>, %arg2: memref<1x32xf32, #tpu.memory_space<vmem>>, %arg3: memref<1x32xf32, #tpu.memory_space<vmem>>, %arg4: memref<32x128xbf16, #tpu.memory_space<vmem>>, %arg5: memref<1x128xf32, #tpu.memory_space<vmem>>, %arg6: memref<128x32xbf16, #tpu.memory_space<vmem>>, %arg7: memref<1x32xf32, #tpu.memory_space<vmem>>, %arg8: memref<16x32xf32, #tpu.memory_space<vmem>>) attributes {dimension_semantics = [#tpu.dimension_semantics<parallel>], iteration_bounds = array<i64: 1>, scalar_prefetch = 0 : i64, scratch_operands = 0 : i64, tpu.core_type = #tpu.core_type<tc>, window_params = [{transform_indices = @transform_0, window_bounds = array<i64: 16, 32>}, {pipeline_mode = #tpu.pipeline_mode<synchronous>, transform_indices = @transform_1, window_bounds = array<i64: 1, 32>}, {pipeline_mode = #tpu.pipeline_mode<synchronous>, transform_indices = @transform_2, window_bounds = array<i64: 1, 32>}, {pipeline_mode = #tpu.pipeline_mode<synchronous>, transform_indices = @transform_3, window_bounds = array<i64: 32, 128>}, {pipeline_mode = #tpu.pipeline_mode<synchronous>, transform_indices = @transform_4, window_bounds = array<i64: 1, 128>}, {pipeline_mode = #tpu.pipeline_mode<synchronous>, transform_indices = @transform_5, window_bounds = array<i64: 128, 32>}, {pipeline_mode = #tpu.pipeline_mode<synchronous>, transform_indices = @transform_6, window_bounds = array<i64: 1, 32>}, {transform_indices = @transform_7, window_bounds = array<i64: 16, 32>}]} {
    %c0 = arith.constant 0 : index
    %c0_0 = arith.constant 0 : index
    %0 = vector.load %arg1[%c0, %c0_0] : memref<16x32xf32, #tpu.memory_space<vmem>>, vector<16x32xf32>
    %cst = arith.constant dense<0.000000e+00> : vector<16xf32>
    %1 = vector.multi_reduction <add>, %0, %cst [1] : vector<16x32xf32> to vector<16xf32>
    %2 = vector.shape_cast %1 : vector<16xf32> to vector<16x1xf32>
    %cst_1 = arith.constant 3.200000e+01 : f32
    %3 = vector.broadcast %cst_1 : f32 to vector<16x1xf32>
    %4 = arith.divf %2, %3 : vector<16x1xf32>
    %5 = vector.broadcast %4 : vector<16x1xf32> to vector<16x32xf32>
    %6 = arith.subf %0, %5 : vector<16x32xf32>
    %7 = arith.mulf %6, %6 : vector<16x32xf32>
    %cst_2 = arith.constant dense<0.000000e+00> : vector<16xf32>
    %8 = vector.multi_reduction <add>, %7, %cst_2 [1] : vector<16x32xf32> to vector<16xf32>
    %9 = vector.shape_cast %8 : vector<16xf32> to vector<16x1xf32>
    %cst_3 = arith.constant 3.200000e+01 : f32
    %10 = vector.broadcast %cst_3 : f32 to vector<16x1xf32>
    %11 = arith.divf %9, %10 : vector<16x1xf32>
    %12 = vector.broadcast %4 : vector<16x1xf32> to vector<16x32xf32>
    %13 = arith.subf %0, %12 : vector<16x32xf32>
    %cst_4 = arith.constant 9.99999974E-6 : f32
    %14 = vector.broadcast %cst_4 : f32 to vector<16x1xf32>
    %15 = arith.addf %11, %14 : vector<16x1xf32>
    %16 = math.rsqrt %15 : vector<16x1xf32>
    %17 = vector.broadcast %16 : vector<16x1xf32> to vector<16x32xf32>
    %18 = arith.mulf %13, %17 : vector<16x32xf32>
    %c0_5 = arith.constant 0 : index
    %c0_6 = arith.constant 0 : index
    %19 = vector.load %arg2[%c0_5, %c0_6] : memref<1x32xf32, #tpu.memory_space<vmem>>, vector<1x32xf32>
    %20 = vector.broadcast %19 : vector<1x32xf32> to vector<16x32xf32>
    %21 = arith.mulf %18, %20 : vector<16x32xf32>
    %c0_7 = arith.constant 0 : index
    %c0_8 = arith.constant 0 : index
    %22 = vector.load %arg3[%c0_7, %c0_8] : memref<1x32xf32, #tpu.memory_space<vmem>>, vector<1x32xf32>
    %23 = vector.broadcast %22 : vector<1x32xf32> to vector<16x32xf32>
    %24 = arith.addf %21, %23 : vector<16x32xf32>
    %25 = arith.truncf %24 : vector<16x32xf32> to vector<16x32xbf16>
    %c0_9 = arith.constant 0 : index
    %c0_10 = arith.constant 0 : index
    %26 = vector.load %arg4[%c0_9, %c0_10] : memref<32x128xbf16, #tpu.memory_space<vmem>>, vector<32x128xbf16>
    %cst_11 = arith.constant dense<0.000000e+00> : vector<16x128xf32>
    %27 = tpu.matmul %25, %26, %cst_11 {dimension_numbers = #tpu.dot_dimension_numbers<[1], [0], [0], [1], [0, 0, 1, 1], [], []>} : vector<16x32xbf16>, vector<32x128xbf16>, vector<16x128xf32> -> vector<16x128xf32>
    %c0_12 = arith.constant 0 : index
    %c0_13 = arith.constant 0 : index
    %28 = vector.load %arg5[%c0_12, %c0_13] : memref<1x128xf32, #tpu.memory_space<vmem>>, vector<1x128xf32>
    %29 = vector.broadcast %28 : vector<1x128xf32> to vector<16x128xf32>
    %30 = arith.addf %27, %29 : vector<16x128xf32>
    %cst_14 = arith.constant 5.000000e-01 : f32
    %31 = vector.broadcast %cst_14 : f32 to vector<16x128xf32>
    %32 = arith.mulf %31, %30 : vector<16x128xf32>
    %cst_15 = arith.constant 0.707106769 : f32
    %33 = vector.broadcast %cst_15 : f32 to vector<16x128xf32>
    %34 = arith.mulf %30, %33 : vector<16x128xf32>
    %35 = math.erf %34 : vector<16x128xf32>
    %cst_16 = arith.constant 1.000000e+00 : f32
    %36 = vector.broadcast %cst_16 : f32 to vector<16x128xf32>
    %37 = arith.addf %36, %35 : vector<16x128xf32>
    %38 = arith.mulf %32, %37 : vector<16x128xf32>
    %39 = arith.truncf %38 : vector<16x128xf32> to vector<16x128xbf16>
    %c0_17 = arith.constant 0 : index
    %c0_18 = arith.constant 0 : index
    %40 = vector.load %arg6[%c0_17, %c0_18] : memref<128x32xbf16, #tpu.memory_space<vmem>>, vector<128x32xbf16>
    %cst_19 = arith.constant dense<0.000000e+00> : vector<16x32xf32>
    %41 = tpu.matmul %39, %40, %cst_19 {dimension_numbers = #tpu.dot_dimension_numbers<[1], [0], [0], [1], [0, 0, 1, 1], [], []>} : vector<16x128xbf16>, vector<128x32xbf16>, vector<16x32xf32> -> vector<16x32xf32>
    %c0_20 = arith.constant 0 : index
    %c0_21 = arith.constant 0 : index
    %42 = vector.load %arg7[%c0_20, %c0_21] : memref<1x32xf32, #tpu.memory_space<vmem>>, vector<1x32xf32>
    %43 = vector.broadcast %42 : vector<1x32xf32> to vector<16x32xf32>
    %44 = arith.addf %41, %43 : vector<16x32xf32>
    %c0_22 = arith.constant 0 : index
    %c0_23 = arith.constant 0 : index
    %45 = vector.load %arg8[%c0_22, %c0_23] : memref<16x32xf32, #tpu.memory_space<vmem>>, vector<16x32xf32>
    tpu.vector_store %arg8[%c0_22, %c0_23], %44 {strides = array<i32>} : memref<16x32xf32, #tpu.memory_space<vmem>>, vector<16x32xf32>,
    return
  }
  func.func @transform_0(%arg0: i32) -> (i32, i32) {
    %c0_i32 = arith.constant 0 : i32
    %c0_i32_0 = arith.constant 0 : i32
    return %arg0, %c0_i32 : i32, i32
  }
  func.func @transform_1(%arg0: i32) -> (i32, i32) {
    %c0_i32 = arith.constant 0 : i32
    %c0_i32_0 = arith.constant 0 : i32
    %c0_i32_1 = arith.constant 0 : i32
    return %c0_i32, %c0_i32_0 : i32, i32
  }
  func.func @transform_2(%arg0: i32) -> (i32, i32) {
    %c0_i32 = arith.constant 0 : i32
    %c0_i32_0 = arith.constant 0 : i32
    %c0_i32_1 = arith.constant 0 : i32
    return %c0_i32, %c0_i32_0 : i32, i32
  }
  func.func @transform_3(%arg0: i32) -> (i32, i32) {
    %c0_i32 = arith.constant 0 : i32
    %c0_i32_0 = arith.constant 0 : i32
    %c0_i32_1 = arith.constant 0 : i32
    return %c0_i32, %c0_i32_0 : i32, i32
  }
  func.func @transform_4(%arg0: i32) -> (i32, i32) {
    %c0_i32 = arith.constant 0 : i32
    %c0_i32_0 = arith.constant 0 : i32
    %c0_i32_1 = arith.constant 0 : i32
    return %c0_i32, %c0_i32_0 : i32, i32
  }
  func.func @transform_5(%arg0: i32) -> (i32, i32) {
    %c0_i32 = arith.constant 0 : i32
    %c0_i32_0 = arith.constant 0 : i32
    %c0_i32_1 = arith.constant 0 : i32
    return %c0_i32, %c0_i32_0 : i32, i32
  }
  func.func @transform_6(%arg0: i32) -> (i32, i32) {
    %c0_i32 = arith.constant 0 : i32
    %c0_i32_0 = arith.constant 0 : i32
    %c0_i32_1 = arith.constant 0 : i32
    return %c0_i32, %c0_i32_0 : i32, i32
  }
  func.func @transform_7(%arg0: i32) -> (i32, i32) {
    %c0_i32 = arith.constant 0 : i32
    %c0_i32_0 = arith.constant 0 : i32
    return %arg0, %c0_i32 : i32, i32
  }
}

</mosaic_0001>

<bundles_post_ra>
// kernel: tpu_custom_call.1
= control target key start
LH: loop header
LB: loop body
LE: loop exit
PB: predicated region body
PF: predicated region fallthrough
CT: control target
= control target key end

     0   :  { %vm30_vm0 = vcmask 261120   ;;  %s540_s0 = inlined_call_operand.vmem [shape: f32[16,32], index: 0, kind: input, shape index: {}]   ;;  %s541_s1 = inlined_call_operand.vmem [shape: f32[1,32], index: 1, kind: input, shape index: {}]   ;;  %s542_s2 = inlined_call_operand.vmem [shape: f32[1,32], index: 2, kind: input, shape index: {}]   ;;  %s543_s3 = inlined_call_operand.vmem [shape: bf16[32,128], index: 3, kind: input, shape index: {}]   ;;  %s544_s4 = inlined_call_operand.vmem [shape: f32[1,128], index: 4, kind: input, shape index: {}]   ;;  %s545_s5 = inlined_call_operand.vmem [shape: bf16[128,32], index: 5, kind: input, shape index: {}]   ;;  %s546_s6 = inlined_call_operand.vmem [shape: f32[1,32], index: 6, kind: input, shape index: {}]   ;;  %s547_s7 = inlined_call_operand.hbm [shape: f32[16,32], index: 7, kind: output, shape index: {}]  }
   0x1   :  { %v28_v0 = vld [vmem:[%s540_s0] sm:$0xff] }
   0x2   :  { %v31_v1 = vsel %vm30_vm0, %v28_v0, 0.0 }
   0x3   :  { %32 = vadd.xlane.f32.xlu0 %v31_v1 }
   0x4   :  { %12 = vsyncpa [#allocation3], 0  ;;  %v29_v2 = vld [vmem:[%s540_s0 + $0x8] sm:$0xff]  ;;  %v420_v4 = vmov 32.0   ;;  %v366_v23 = vld [vmem:[%s543_s3] sm:$0xff]  ;;  %s421_s27 = smov [#allocation2]  }
   0x5   :  { %v34_v3 = vsel %vm30_vm0, %v29_v2, 0.0  ;;  %384 = vrcp.f32 %v420_v4  ;;  %v367_v21 = vld [vmem:[%s543_s3 + $0x8] sm:$0xff]  ;;  %v380_v42 = vld [vmem:[%s541_s1] ss:$0 sm:$0xff]  ;;  %v375_v53 = vld [vmem:[%s545_s5 + $0x38] sm:$0xff]  ;;  %s309_s0 = sshll.u32 %s421_s27, 4  ;;  %s310_s0 = int_to_ptr.vmem [resolvable:$true] %s309_s0 }
   0x6   :  { %124 = vmatpush.bf16.msra.mxu0 %v367_v21  ;;  %v381_v47 = vld [vmem:[%s542_s2] ss:$0 sm:$0xff]  ;;  %289 = vmatpush.bf16.msra.mxu1 %v375_v53  ;;  %v374_v57 = vld [vmem:[%s545_s5 + $0x30] sm:$0xff]  ;;  %v373_v59 = vld [vmem:[%s545_s5 + $0x28] sm:$0xff]  ;;  %s311_s30 = sshll.u32 %s547_s7, 4  ;;  %s422_s3 = smov 128   ;;  %s312_s30 = int_to_ptr.hbm [resolvable:$true] %s311_s30 }
   0x7   :  { %v382_v52 = vld [vmem:[%s544_s4] ss:$0 sm:$0xff]  ;;  %s423_s8 = smov 8  }
   0xa   :  { %125 = vmatpush.bf16.msra.mxu0 %v366_v23  ;;  %290 = vmatpush.bf16.msra.mxu1 %v374_v57 }
   0xb   :  { %35 = vadd.xlane.f32.xlu0 %v34_v3  ;;  %v385_v5 = vpop.eup %384 }
   0xc   :  { %v38_v6 = vmul.f32 32.0, %v385_v5  ;;  %vm42_vm1 = vweird.f32 %v385_v5 }
   0xe   :  { %v39_v7 = vsub.f32 1.0, %v38_v6  ;;  %291 = vmatpush.bf16.msra.mxu1 %v373_v59  ;;  %v371_v6 = vld [vmem:[%s545_s5 + $0x18] sm:$0xff] }
  0x10   :  { %v40_v8 = vmul.f32 %v385_v5, %v39_v7 }
  0x12   :  { %v41_v9 = vadd.f32 %v385_v5, %v40_v8 }
  0x14   :  { %v43_v10 = vsel %vm42_vm1, %v385_v5, %v41_v9 }
  0x76   :  { %v33_v11 = vpop.xlane.xlu0 %32 }
  0x77   :  { %v44_v12 = vmul.f32 %v43_v10, %v33_v11 }
  0x79   :  { %v46_v13 = vsub.f32 %v28_v0, %v44_v12  ;;  %v372_v0 = vld [vmem:[%s545_s5 + $0x20] sm:$0xff]  ;;  %v370_v12 = vld [vmem:[%s545_s5 + $0x10] sm:$0xff] }
  0x7a   :  { %292 = vmatpush.bf16.msra.mxu1 %v372_v0 }
  0x7b   :  { %v48_v14 = vmul.f32 %v46_v13, %v46_v13 }
  0x7d   :  { %v50_v15 = vsel %vm30_vm0, %v48_v14, 0.0 }
  0x7e   :  { %51 = vadd.xlane.f32.xlu1 %v50_v15  ;;  %v36_v16 = vpop.xlane.xlu0 %35  ;;  %293 = vmatpush.bf16.msra.mxu1 %v371_v6 }
  0x7f   :  { %v45_v17 = vmul.f32 %v43_v10, %v36_v16 }
  0x81   :  { %v47_v18 = vsub.f32 %v29_v2, %v45_v17 }
  0x82   :  { %294 = vmatpush.bf16.msra.mxu1 %v370_v12 }
  0x83   :  { %v49_v19 = vmul.f32 %v47_v18, %v47_v18 }
  0x85   :  { %v53_v20 = vsel %vm30_vm0, %v49_v19, 0.0 }
  0x86   :  { %54 = vadd.xlane.f32.xlu1 %v53_v20  ;;  %v369_v20 = vld [vmem:[%s545_s5 + $0x8] sm:$0xff] }
  0x87   :  { %295 = vmatpush.bf16.msra.mxu1 %v369_v20 }
  0xf1   :  { %v52_v22 = vpop.xlane.xlu1 %51 }
  0xf2   :  { %v56_v24 = vmul.f32 %v52_v22, %v43_v10 }
  0xf4   :  { %v58_v25 = vadd.f32 1e-05, %v56_v24 }
  0xf6   :  { %386 = vrsqrt.f32 %v58_v25  ;;  %vm66_vm3 = vweird.f32 %v58_v25 }
  0xf9   :  { %v55_v26 = vpop.xlane.xlu1 %54 }
  0xfa   :  { %v57_v27 = vmul.f32 %v55_v26, %v43_v10 }
  0xfc   :  { %v387_v28 = vpop.eup %386  ;;  %v59_v29 = vadd.f32 1e-05, %v57_v27  ;;  %v368_v27 = vld [vmem:[%s545_s5] sm:$0xff] }
  0xfd   :  { %v61_v30 = vmul.f32 %v387_v28, %v58_v25  ;;  %vm67_vm2 = vweird.f32 %v387_v28  ;;  %296 = vmatpush.bf16.msra.mxu1 %v368_v27 }
  0xfe   :  { %388 = vrsqrt.f32 %v59_v29  ;;  %vm68_vm4 = vmor %vm66_vm3, %vm67_vm2  ;;  %vm76_vm6 = vweird.f32 %v59_v29 }
  0xff   :  { %v62_v31 = vmul.f32 %v387_v28, %v61_v30 }
 0x101   :  { %v63_v32 = vmul.f32 0.5, %v62_v31 }
 0x103   :  { %v64_v33 = vsub.f32 1.5, %v63_v32 }
 0x104   :  { %v389_v34 = vpop.eup %388 }
 0x105   :  { %v65_v35 = vmul.f32 %v387_v28, %v64_v33  ;;  %v71_v36 = vmul.f32 %v389_v34, %v59_v29  ;;  %vm77_vm5 = vweird.f32 %v389_v34 }
 0x106   :  { %vm78_vm7 = vmor %vm76_vm6, %vm77_vm5 }
 0x107   :  { %v72_v37 = vmul.f32 %v389_v34, %v71_v36  ;;  %v69_v38 = vsel %vm68_vm4, %v387_v28, %v65_v35 }
 0x108   :  { %v80_v41 = vmul.f32 %v69_v38, %v46_v13 }
 0x109   :  { %v73_v39 = vmul.f32 0.5, %v72_v37 }
 0x10a   :  { %v86_v46 = vmul.f32 %v380_v42, %v80_v41 }
 0x10b   :  { %v74_v40 = vsub.f32 1.5, %v73_v39 }
 0x10c   :  { %v92_v49 = vadd.f32 %v381_v47, %v86_v46 }
 0x10d   :  { %v75_v43 = vmul.f32 %v389_v34, %v74_v40 }
 0x10f   :  { %v79_v44 = vsel %vm78_vm7, %v389_v34, %v75_v43 }
 0x110   :  { %v81_v45 = vmul.f32 %v79_v44, %v47_v18 }
 0x112   :  { %v87_v48 = vmul.f32 %v380_v42, %v81_v45 }
 0x114   :  { %v93_v50 = vadd.f32 %v381_v47, %v87_v48 }
 0x116   :  { %v94_v51 = vpack.c.bf16 %v93_v50, %v92_v49 }
 0x118   :  { %331 = vmatmul.msk.bf16.vlgmr.msra.gmra.mxu0 %vm30_vm0, %v94_v51 }
 0x195   :  { %v127_v54 = vpop.f32.mrf.mxu0 }
 0x196   :  { %v493_v55 = vadd.f32 %v382_v52, %v127_v54 }
 0x198   :  { %v496_v56 = vmul.f32 0.70710677, %v493_v55 }
 0x19a   :  { %v136_v58 = vmul.f32 %v496_v56, %v496_v56 }
 0x19c   :  { %v137_v60 = vmin.f32 %v136_v58, 16.0 }
 0x19d   :  { %v129_v61 = vpop.f32.mrf.mxu0 }
 0x19e   :  { %v138_v62 = vmul.f32 2.1237322e-06, %v137_v60  ;;  %v506_v63 = vadd.f32 %v382_v52, %v129_v61  ;;  %v149_v1 = vmul.f32 3.8918573e-05, %v137_v60 }
 0x1a0   :  { %v139_v2 = vadd.f32 0.00028619796, %v138_v62  ;;  %v512_v3 = vmul.f32 0.70710677, %v506_v63  ;;  %v150_v4 = vadd.f32 0.001143296, %v149_v1 }
 0x1a2   :  { %v176_v5 = vmul.f32 %v512_v3, %v512_v3  ;;  %v140_v7 = vmul.f32 %v139_v2, %v137_v60  ;;  %v151_v8 = vmul.f32 %v150_v4, %v137_v60 }
 0x1a4   :  { %v177_v9 = vmin.f32 %v176_v5, 16.0  ;;  %v152_v10 = vadd.f32 0.014752088, %v151_v8  ;;  %v141_v14 = vadd.f32 0.0036580483, %v140_v7 }
 0x1a6   :  { %v178_v11 = vmul.f32 2.1237322e-06, %v177_v9  ;;  %v189_v13 = vmul.f32 3.8918573e-05, %v177_v9  ;;  %v153_v15 = vmul.f32 %v152_v10, %v137_v60  ;;  %v142_v22 = vmul.f32 %v141_v14, %v137_v60 }
 0x1a7   :  { %v133_v14 = vmul.f32 0.5, %v506_v63 }
 0x1a8   :  { %v179_v16 = vadd.f32 0.00028619796, %v178_v11  ;;  %v190_v17 = vadd.f32 0.001143296, %v189_v13  ;;  %v154_v18 = vadd.f32 0.112945676, %v153_v15 }
 0x1a9   :  { %v143_v29 = vadd.f32 0.05243302, %v142_v22  ;;  %v132_v13 = vmul.f32 0.5, %v493_v55 }
 0x1aa   :  { %v180_v19 = vmul.f32 %v179_v16, %v177_v9  ;;  %v191_v21 = vmul.f32 %v190_v17, %v177_v9  ;;  %v155_v23 = vmul.f32 %v154_v18, %v137_v60 }
 0x1ab   :  { %v144_v35 = vmul.f32 %v143_v29, %v137_v60 }
 0x1ac   :  { %v181_v24 = vadd.f32 0.0036580483, %v180_v19  ;;  %v192_v25 = vadd.f32 0.014752088, %v191_v21  ;;  %v156_v26 = vadd.f32 0.4994258, %v155_v23 }
 0x1ad   :  { %v145_v39 = vadd.f32 0.18741608, %v144_v35 }
 0x1ae   :  { %v193_v28 = vmul.f32 %v192_v25, %v177_v9  ;;  %v157_v30 = vmul.f32 %v156_v26, %v137_v60  ;;  %v182_v31 = vmul.f32 %v181_v24, %v177_v9 }
 0x1af   :  { %v146_v44 = vmul.f32 %v145_v39, %v137_v60 }
 0x1b0   :  { %v194_v32 = vadd.f32 0.112945676, %v193_v28  ;;  %v158_v33 = vadd.f32 1.0, %v157_v30  ;;  %v183_v36 = vadd.f32 0.05243302, %v182_v31 }
 0x1b1   :  { %v147_v50 = vadd.f32 1.1283791, %v146_v44 }
 0x1b2   :  { %v195_v34 = vmul.f32 %v194_v32, %v177_v9  ;;  %390 = vrcp.f32 %v158_v33  ;;  %v184_v40 = vmul.f32 %v183_v36, %v177_v9  ;;  %v170_v47 = vand.u32 2147483648, %v158_v33 }
 0x1b3   :  { %v168_v49 = vand.u32 2147483647, %v158_v33  ;;  %vm164_vm9 = vweird.f32 %v158_v33  ;;  %v148_v59 = vmul.f32 %v147_v50, %v496_v56 }
 0x1b4   :  { %v196_v37 = vadd.f32 0.4994258, %v195_v34  ;;  %v185_v45 = vadd.f32 0.18741608, %v184_v40  ;;  %v171_v54 = vor.u32 1.1754944e-38, %v170_v47 }
 0x1b5   :  { %vm169_vm11 = vcmp.eq.f32.partialorder %v168_v49, 8.507059e+37 }
 0x1b6   :  { %v197_v38 = vmul.f32 %v196_v37, %v177_v9  ;;  %v186_v52 = vmul.f32 %v185_v45, %v177_v9 }
 0x1b8   :  { %v198_v41 = vadd.f32 1.0, %v197_v38  ;;  %v391_v42 = vpop.eup %390  ;;  %v187_v62 = vadd.f32 1.1283791, %v186_v52 }
 0x1b9   :  { %v160_v43 = vmul.f32 %v391_v42, %v158_v33  ;;  %vm165_vm8 = vweird.f32 %v391_v42 }
 0x1ba   :  { %392 = vrcp.f32 %v198_v41  ;;  %vm166_vm10 = vmor %vm164_vm9, %vm165_vm8  ;;  %v210_v0 = vand.u32 2147483648, %v198_v41  ;;  %v208_v4 = vand.u32 2147483647, %v198_v41  ;;  %vm204_vm13 = vweird.f32 %v198_v41 }
 0x1bb   :  { %v161_v46 = vsub.f32 1.0, %v160_v43  ;;  %v188_v7 = vmul.f32 %v187_v62, %v512_v3  ;;  %v383_v3 = vld [vmem:[%s546_s6] ss:$0 sm:$0xff] }
 0x1bc   :  { %v211_v6 = vor.u32 1.1754944e-38, %v210_v0  ;;  %vm209_vm15 = vcmp.eq.f32.partialorder %v208_v4, 8.507059e+37 }
 0x1bd   :  { %v162_v48 = vmul.f32 %v391_v42, %v161_v46 }
 0x1bf   :  { %v163_v53 = vadd.f32 %v391_v42, %v162_v48 }
 0x1c0   :  { %v393_v51 = vpop.eup %392 }
 0x1c1   :  { %v200_v57 = vmul.f32 %v393_v51, %v198_v41  ;;  %v167_v58 = vsel %vm166_vm10, %v391_v42, %v163_v53  ;;  %vm205_vm12 = vweird.f32 %v393_v51 }
 0x1c2   :  { %v172_v61 = vsel %vm169_vm11, %v171_v54, %v167_v58  ;;  %vm206_vm14 = vmor %vm204_vm13, %vm205_vm12 }
 0x1c3   :  { %v201_v60 = vsub.f32 1.0, %v200_v57  ;;  %v173_v1 = vmul.f32 %v172_v61, %v148_v59 }
 0x1c5   :  { %v202_v2 = vmul.f32 %v393_v51, %v201_v60  ;;  %v332_v8 = vclamps-f32 %v173_v1, 1.0 }
 0x1c7   :  { %v203_v5 = vadd.f32 %v393_v51, %v202_v2  ;;  %v216_v12 = vadd.f32 1.0, %v332_v8 }
 0x1c9   :  { %v207_v9 = vsel %vm206_vm14, %v393_v51, %v203_v5  ;;  %v218_v16 = vmul.f32 %v216_v12, %v132_v13 }
 0x1ca   :  { %v212_v10 = vsel %vm209_vm15, %v211_v6, %v207_v9 }
 0x1cb   :  { %v213_v11 = vmul.f32 %v212_v10, %v188_v7 }
 0x1cd   :  { %v333_v56 = vclamps-f32 %v213_v11, 1.0 }
 0x1cf   :  { %v217_v15 = vadd.f32 1.0, %v333_v56 }
 0x1d1   :  { %v219_v17 = vmul.f32 %v217_v15, %v133_v14 }
 0x1d3   :  { %v220_v18 = vpack.c.bf16 %v219_v17, %v218_v16 }
 0x1d5   :  { %297 = vmatmul.bf16.vlgmr.msra.gmra.mxu1 %v220_v18 }
 0x252   :  { %v298_v19 = vpop.f32.mrf.mxu1 }
 0x253   :  { %v299_v20 = vadd.f32 %v383_v3, %v298_v19 }
 0x255   :  { %303 = vst.msk [vmem:[#allocation2] sm:$0xff] %vm30_vm0, %v299_v20 }
 0x25a   :  { %v300_v55 = vpop.f32.mrf.mxu1 }
 0x25b   :  { %v301_v63 = vadd.f32 %v383_v3, %v300_v55 }
 0x25d   :  { %304 = vst.msk [vmem:[#allocation2 + $0x8] sm:$0xff] %vm30_vm0, %v301_v63 }
 0x25e   :  { %317 = dma.vmem_to_hbm [thread:$0]  %s310_s0, 256, %s312_s30, [#allocation3], %s422_s3, %s422_s3, %s423_s8  }
 0x25f   :  { %418 = dma.done.wait [#allocation3], 256  }
 0x260   :  { %419 = vsyncadd [#allocation3], 4294967040 }
 0x261   :  { %322 = vsyncpa [#allocation3], 1 }

</bundles_post_ra>
